<compile_context>
chip_gen: v5e
topology: v5e:2x2
jax: 0.10.0
libtpu: 0.0.40
codegen_flags: <defaults>
</compile_context>

<pallas_src>
import numpy as np
import jax
import jax.numpy as jnp
from jax.experimental import pallas as pl
from jax.experimental.pallas import tpu as pltpu

_LANES = 128
_MAX_ROWS = 1024  # 1024 x 128 f32 = 512 KiB per channel plane per tile


def _rgb2ycbcr_kernel(mat_ref, shift_ref, img_ref, out_ref):
    # mat_ref:   (3, 3) f32 SMEM   (color matrix, already transposed as in __init__)
    # shift_ref: (3,)   f32 SMEM   (per-output-channel shift)
    # img_ref:   (1, 3, TM, 128) f32 VMEM  (planar RGB tile, lane-dense)
    # out_ref:   (1, 3, TM, 128) f32 VMEM  (planar Y/Cb/Cr tile, lane-dense)
    r = img_ref[0, 0]
    g = img_ref[0, 1]
    b = img_ref[0, 2]
    # Hoist the 12 SMEM scalar reads out of the (static) channel loop.
    m = [[mat_ref[i, j] for j in range(3)] for i in range(3)]
    s = [shift_ref[c] for c in range(3)]
    for c in range(3):  # static unroll over 3 output channels; dense (TM,128) stores
        out_ref[0, c] = r * m[0][c] + g * m[1][c] + b * m[2][c] + s[c]


def rgb_to_ycbcr(image, matrix, shift, *, max_rows=_MAX_ROWS):
    """image: (B, 3, H, W) float32 -> (B, H, W, 3) float32 (matches the torch module)."""
    B, C, H, W = image.shape
    assert C == 3
    N = H * W
    M = -(-N // _LANES)  # rows of 128 pixels (ceil)

    if M <= max_rows:
        TM = M           # single spatial tile; block == full extent (always legal)
        M_pad = M
    else:
        TM = max_rows    # multiple of 8 -> legal sublane tiling
        M_pad = -(-M // TM) * TM
    N_pad = M_pad * _LANES

    x = image.reshape(B, 3, N)
    if N_pad != N:
        # Pad the flattened pixel axis so tiles divide evenly; padded pixels are
        # computed and discarded below (no OOB reads/writes in the kernel).
        x = jnp.pad(x, ((0, 0), (0, 0), (0, N_pad - N)))
    x = x.reshape(B, 3, M_pad, _LANES)

    grid = (B, M_pad // TM)

    out_planar = pl.pallas_call(
        _rgb2ycbcr_kernel,
        out_shape=jax.ShapeDtypeStruct((B, 3, M_pad, _LANES), image.dtype),
        grid=grid,
        in_specs=[
            pl.BlockSpec((3, 3), lambda b, j: (0, 0),
                         memory_space=pltpu.MemorySpace.SMEM),
            pl.BlockSpec((3,), lambda b, j: (0,),
                         memory_space=pltpu.MemorySpace.SMEM),
            pl.BlockSpec((1, 3, TM, _LANES), lambda b, j: (b, 0, j, 0)),
        ],
        out_specs=pl.BlockSpec((1, 3, TM, _LANES), lambda b, j: (b, 0, j, 0)),
        compiler_params=pltpu.CompilerParams(
            dimension_semantics=("parallel", "parallel")),
    )(matrix, shift, x)

    out = out_planar.reshape(B, 3, N_pad)
    if N_pad != N:
        out = out[:, :, :N]
    out = out.reshape(B, 3, H, W)
    # Layout-only NCHW -> NHWC permute, delegated to XLA (kept out of the kernel so
    # in-kernel stores stay lane-dense).
    return jnp.transpose(out, (0, 2, 3, 1))


def _reference(image, matrix, shift):
    # Same math as torch: image.permute(0,2,3,1) @ matrix + shift
    return jnp.einsum("bchw,ck->bhwk", image, matrix) + shift


if __name__ == "__main__":
    key = jax.random.PRNGKey(0)

    # Deterministic "parameters" exactly as in the module's __init__.
    matrix = jnp.asarray(
        np.array(
            [[0.299, 0.587, 0.114],
             [-0.168736, -0.331264, 0.5],
             [0.5, -0.418688, -0.081312]],
            dtype=np.float32,
        ).T
    )
    shift = jnp.array([0.0, 0.5, 0.5], dtype=jnp.float32)

    # Case 1: small aligned shape (B, 3, 16, 16) -> H*W = 256 = 2 rows of 128 lanes.
    B, Cc, H, W = 2, 3, 16, 16
    x = jax.random.uniform(key, (B, Cc, H, W), dtype=jnp.float32)
    out = rgb_to_ycbcr(x, matrix, shift)
    jax.block_until_ready(out)
    ref = _reference(x, matrix, shift)
    assert out.shape == (B, H, W, 3)
    assert jnp.allclose(out, ref, atol=1e-5), "mismatch vs reference (aligned case)"

    # Case 2: ragged spatial size (H*W not a multiple of 128) to exercise padding.
    H2, W2 = 20, 20  # 400 pixels -> padded to 512
    x2 = jax.random.uniform(jax.random.PRNGKey(1), (1, 3, H2, W2), dtype=jnp.float32)
    out2 = rgb_to_ycbcr(x2, matrix, shift)
    jax.block_until_ready(out2)
    ref2 = _reference(x2, matrix, shift)
    assert out2.shape == (1, H2, W2, 3)
    assert jnp.allclose(out2, ref2, atol=1e-5), "mismatch vs reference (ragged case)"

    print("KERNEL_OK")
</pallas_src>

<mosaic_0001>
module attributes {stable_mosaic.version = 11 : i64} {
  func.func @_rgb2ycbcr_kernel(%arg0: i32, %arg1: i32, %arg2: memref<3x3xf32, #tpu.memory_space<smem>>, %arg3: memref<3xf32, #tpu.memory_space<smem>>, %arg4: memref<1x3x2x128xf32, #tpu.memory_space<vmem>>, %arg5: memref<1x3x2x128xf32, #tpu.memory_space<vmem>>) attributes {dimension_semantics = [#tpu.dimension_semantics<parallel>, #tpu.dimension_semantics<parallel>], iteration_bounds = array<i64: 2, 1>, scalar_prefetch = 0 : i64, scratch_operands = 0 : i64, tpu.core_type = #tpu.core_type<tc>, window_params = [{transform_indices = @transform_0, window_bounds = array<i64: 3, 3>}, {transform_indices = @transform_1, window_bounds = array<i64: 3>}, {transform_indices = @transform_2, window_bounds = array<i64: 1, 3, 2, 128>}, {transform_indices = @transform_3, window_bounds = array<i64: 1, 3, 2, 128>}]} {
    %c0 = arith.constant 0 : index
    %c0_0 = arith.constant 0 : index
    %c0_1 = arith.constant 0 : index
    %c0_2 = arith.constant 0 : index
    %0 = vector.load %arg4[%c0, %c0_0, %c0_1, %c0_2] : memref<1x3x2x128xf32, #tpu.memory_space<vmem>>, vector<1x1x2x128xf32>
    %1 = vector.shape_cast %0 : vector<1x1x2x128xf32> to vector<2x128xf32>
    %c0_3 = arith.constant 0 : index
    %c1 = arith.constant 1 : index
    %c0_4 = arith.constant 0 : index
    %c0_5 = arith.constant 0 : index
    %2 = vector.load %arg4[%c0_3, %c1, %c0_4, %c0_5] : memref<1x3x2x128xf32, #tpu.memory_space<vmem>>, vector<1x1x2x128xf32>
    %3 = vector.shape_cast %2 : vector<1x1x2x128xf32> to vector<2x128xf32>
    %c0_6 = arith.constant 0 : index
    %c2 = arith.constant 2 : index
    %c0_7 = arith.constant 0 : index
    %c0_8 = arith.constant 0 : index
    %4 = vector.load %arg4[%c0_6, %c2, %c0_7, %c0_8] : memref<1x3x2x128xf32, #tpu.memory_space<vmem>>, vector<1x1x2x128xf32>
    %5 = vector.shape_cast %4 : vector<1x1x2x128xf32> to vector<2x128xf32>
    %c0_9 = arith.constant 0 : index
    %c0_10 = arith.constant 0 : index
    %6 = memref.load %arg2[%c0_9, %c0_10] : memref<3x3xf32, #tpu.memory_space<smem>>
    %c0_11 = arith.constant 0 : index
    %c1_12 = arith.constant 1 : index
    %7 = memref.load %arg2[%c0_11, %c1_12] : memref<3x3xf32, #tpu.memory_space<smem>>
    %c0_13 = arith.constant 0 : index
    %c2_14 = arith.constant 2 : index
    %8 = memref.load %arg2[%c0_13, %c2_14] : memref<3x3xf32, #tpu.memory_space<smem>>
    %c1_15 = arith.constant 1 : index
    %c0_16 = arith.constant 0 : index
    %9 = memref.load %arg2[%c1_15, %c0_16] : memref<3x3xf32, #tpu.memory_space<smem>>
    %c1_17 = arith.constant 1 : index
    %c1_18 = arith.constant 1 : index
    %10 = memref.load %arg2[%c1_17, %c1_18] : memref<3x3xf32, #tpu.memory_space<smem>>
    %c1_19 = arith.constant 1 : index
    %c2_20 = arith.constant 2 : index
    %11 = memref.load %arg2[%c1_19, %c2_20] : memref<3x3xf32, #tpu.memory_space<smem>>
    %c2_21 = arith.constant 2 : index
    %c0_22 = arith.constant 0 : index
    %12 = memref.load %arg2[%c2_21, %c0_22] : memref<3x3xf32, #tpu.memory_space<smem>>
    %c2_23 = arith.constant 2 : index
    %c1_24 = arith.constant 1 : index
    %13 = memref.load %arg2[%c2_23, %c1_24] : memref<3x3xf32, #tpu.memory_space<smem>>
    %c2_25 = arith.constant 2 : index
    %c2_26 = arith.constant 2 : index
    %14 = memref.load %arg2[%c2_25, %c2_26] : memref<3x3xf32, #tpu.memory_space<smem>>
    %c0_27 = arith.constant 0 : index
    %15 = memref.load %arg3[%c0_27] : memref<3xf32, #tpu.memory_space<smem>>
    %c1_28 = arith.constant 1 : index
    %16 = memref.load %arg3[%c1_28] : memref<3xf32, #tpu.memory_space<smem>>
    %c2_29 = arith.constant 2 : index
    %17 = memref.load %arg3[%c2_29] : memref<3xf32, #tpu.memory_space<smem>>
    %18 = vector.broadcast %6 : f32 to vector<2x128xf32>
    %19 = arith.mulf %1, %18 : vector<2x128xf32>
    %20 = vector.broadcast %9 : f32 to vector<2x128xf32>
    %21 = arith.mulf %3, %20 : vector<2x128xf32>
    %22 = arith.addf %19, %21 : vector<2x128xf32>
    %23 = vector.broadcast %12 : f32 to vector<2x128xf32>
    %24 = arith.mulf %5, %23 : vector<2x128xf32>
    %25 = arith.addf %22, %24 : vector<2x128xf32>
    %26 = vector.broadcast %15 : f32 to vector<2x128xf32>
    %27 = arith.addf %25, %26 : vector<2x128xf32>
    %c0_30 = arith.constant 0 : index
    %c0_31 = arith.constant 0 : index
    %c0_32 = arith.constant 0 : index
    %c0_33 = arith.constant 0 : index
    %28 = vector.load %arg5[%c0_30, %c0_31, %c0_32, %c0_33] : memref<1x3x2x128xf32, #tpu.memory_space<vmem>>, vector<1x1x2x128xf32>
    %29 = vector.shape_cast %28 : vector<1x1x2x128xf32> to vector<2x128xf32>
    %30 = vector.shape_cast %27 : vector<2x128xf32> to vector<1x1x2x128xf32>
    tpu.vector_store %arg5[%c0_30, %c0_31, %c0_32, %c0_33], %30 {strides = array<i32>} : memref<1x3x2x128xf32, #tpu.memory_space<vmem>>, vector<1x1x2x128xf32>,
    %31 = vector.broadcast %7 : f32 to vector<2x128xf32>
    %32 = arith.mulf %1, %31 : vector<2x128xf32>
    %33 = vector.broadcast %10 : f32 to vector<2x128xf32>
    %34 = arith.mulf %3, %33 : vector<2x128xf32>
    %35 = arith.addf %32, %34 : vector<2x128xf32>
    %36 = vector.broadcast %13 : f32 to vector<2x128xf32>
    %37 = arith.mulf %5, %36 : vector<2x128xf32>
    %38 = arith.addf %35, %37 : vector<2x128xf32>
    %39 = vector.broadcast %16 : f32 to vector<2x128xf32>
    %40 = arith.addf %38, %39 : vector<2x128xf32>
    %c0_34 = arith.constant 0 : index
    %c1_35 = arith.constant 1 : index
    %c0_36 = arith.constant 0 : index
    %c0_37 = arith.constant 0 : index
    %41 = vector.load %arg5[%c0_34, %c1_35, %c0_36, %c0_37] : memref<1x3x2x128xf32, #tpu.memory_space<vmem>>, vector<1x1x2x128xf32>
    %42 = vector.shape_cast %41 : vector<1x1x2x128xf32> to vector<2x128xf32>
    %43 = vector.shape_cast %40 : vector<2x128xf32> to vector<1x1x2x128xf32>
    tpu.vector_store %arg5[%c0_34, %c1_35, %c0_36, %c0_37], %43 {strides = array<i32>} : memref<1x3x2x128xf32, #tpu.memory_space<vmem>>, vector<1x1x2x128xf32>,
    %44 = vector.broadcast %8 : f32 to vector<2x128xf32>
    %45 = arith.mulf %1, %44 : vector<2x128xf32>
    %46 = vector.broadcast %11 : f32 to vector<2x128xf32>
    %47 = arith.mulf %3, %46 : vector<2x128xf32>
    %48 = arith.addf %45, %47 : vector<2x128xf32>
    %49 = vector.broadcast %14 : f32 to vector<2x128xf32>
    %50 = arith.mulf %5, %49 : vector<2x128xf32>
    %51 = arith.addf %48, %50 : vector<2x128xf32>
    %52 = vector.broadcast %17 : f32 to vector<2x128xf32>
    %53 = arith.addf %51, %52 : vector<2x128xf32>
    %c0_38 = arith.constant 0 : index
    %c2_39 = arith.constant 2 : index
    %c0_40 = arith.constant 0 : index
    %c0_41 = arith.constant 0 : index
    %54 = vector.load %arg5[%c0_38, %c2_39, %c0_40, %c0_41] : memref<1x3x2x128xf32, #tpu.memory_space<vmem>>, vector<1x1x2x128xf32>
    %55 = vector.shape_cast %54 : vector<1x1x2x128xf32> to vector<2x128xf32>
    %56 = vector.shape_cast %53 : vector<2x128xf32> to vector<1x1x2x128xf32>
    tpu.vector_store %arg5[%c0_38, %c2_39, %c0_40, %c0_41], %56 {strides = array<i32>} : memref<1x3x2x128xf32, #tpu.memory_space<vmem>>, vector<1x1x2x128xf32>,
    return
  }
  func.func @transform_0(%arg0: i32, %arg1: i32) -> (i32, i32) {
    %c0_i32 = arith.constant 0 : i32
    %c0_i32_0 = arith.constant 0 : i32
    %c0_i32_1 = arith.constant 0 : i32
    return %c0_i32, %c0_i32_0 : i32, i32
  }
  func.func @transform_1(%arg0: i32, %arg1: i32) -> i32 {
    %c0_i32 = arith.constant 0 : i32
    %c0_i32_0 = arith.constant 0 : i32
    return %c0_i32 : i32
  }
  func.func @transform_2(%arg0: i32, %arg1: i32) -> (i32, i32, i32, i32) {
    %c0_i32 = arith.constant 0 : i32
    %c0_i32_0 = arith.constant 0 : i32
    %c0_i32_1 = arith.constant 0 : i32
    return %arg0, %c0_i32, %arg1, %c0_i32_0 : i32, i32, i32, i32
  }
  func.func @transform_3(%arg0: i32, %arg1: i32) -> (i32, i32, i32, i32) {
    %c0_i32 = arith.constant 0 : i32
    %c0_i32_0 = arith.constant 0 : i32
    %c0_i32_1 = arith.constant 0 : i32
    return %arg0, %c0_i32, %arg1, %c0_i32_0 : i32, i32, i32, i32
  }
}

</mosaic_0001>

<bundles_post_ra>
// kernel: tpu_custom_call.1
= control target key start
LH: loop header
LB: loop body
LE: loop exit
PB: predicated region body
PF: predicated region fallthrough
CT: control target
= control target key end

     0   :  { %s872_s0 = inlined_call_operand.hbm [shape: f32[3,3], index: 0, kind: input, shape index: {}]   ;;  %s873_s1 = inlined_call_operand.hbm [shape: f32[3], index: 1, kind: input, shape index: {}]   ;;  %s874_s2 = inlined_call_operand.hbm [shape: f32[2,3,2,128], index: 2, kind: input, shape index: {}]   ;;  %s875_s3 = inlined_call_operand.hbm [shape: f32[2,3,2,128], index: 3, kind: output, shape index: {}]  }
   0x1   :  { %876 = sst [smem:[#allocation14_spill]] %s872_s0 }
   0x2   :  { %8 = vsyncpa [#allocation5], 0 }
   0x3   :  { %9 = vsyncpa [#allocation7], 0 }
   0x4   :  { %10 = vsyncpa [#allocation3], 0 }
   0x5   :  { %12 = vsyncpa [#allocation3 + $0x1], 0 }
   0x6   :  { %13 = vsyncpa [#allocation4], 0 }
   0x7   :  { %15 = vsyncpa [#allocation4 + $0x1], 0  ;;  %s707_s12 = smov 0   ;;  %s709_s13 = smov 0  }
   0x8   :  { %s711_s14 = smov 0   ;;  %s713_s15 = smov 0  }
   0x9   :  { %s715_s16 = smov 0   ;;  %s717_s17 = smov 0  }
   0xa LB: > { %s411_s18 = sadd.s32 4294967295, %s679_s17   ;;  %s412_s19 = sadd.s32 4294967294, %s679_s17   ;;  %s679_s17 = sphi %s717_s17, %s21_s17   ;;  %s675_s16 = sphi %s715_s16, %s889_s16   ;;  %s671_s15 = sphi %s713_s15, %s888_s15   ;;  %s667_s14 = sphi %s711_s14, %s887_s14   ;;  %s663_s13 = sphi %s709_s13, %s886_s13   ;;  %s659_s12 = sphi %s707_s12, %s885_s12  }
   0xb   : > { %s84_s20 = sadd.s32 1, %s667_s14  ;;  %p91_p0 = scmp.ne.s32.totalorder %s667_s14, %s663_s13 }
   0xc   : > { %p92_p1 = scmp.eq.s32.totalorder %s679_s17, 0  ;;  %p97_p2 = scmp.ne.s32.totalorder %s663_s13, %s659_s12 }
   0xd   : > { %p745_p3 = scmp.eq.s32.totalorder %s411_s18, 0  ;;  %p123_p4 = scmp.eq.s32.totalorder %s411_s18, 1 }
   0xe   : > { %p749_p5 = por %p92_p1, %p91_p0  ;;  %p129_p6 = scmp.eq.s32.totalorder %s412_s19, 1 }
   0xf   : > { %p755_p7 = por %p745_p3, %p97_p2  ;;  %p759_p8 = por %p123_p4, %p91_p0 }
  0x10   : > { %p763_p9 = por %p129_p6, %p97_p2  ;;  %p413_p10 = scmp.ge.s32.totalorder %s679_s17, 1 }
  0x11   : > { %p136_p11 = scmp.lt.s32.totalorder %s679_s17, 3  ;;  %s882_s0 = sld [smem:[#allocation14_spill]] }
  0x12   : > { %p416_p13 = scmp.ge.s32.totalorder %s679_s17, 2  ;;  %p471_p0 = scmp.lt.s32.totalorder %s679_s17, 2 }
  0x13   : > { %p772_p12 = pnand %p413_p10, %p136_p11  ;;  %s158_s5 = sshll.u32 %s873_s1, 4  ;;  %s159_s5 = int_to_ptr.hbm [resolvable:$true] %s158_s5 }
  0x14   : > { %p785_p2 = pnand %p471_p0, %p749_p5  ;;  %s681_s7 = smov [#allocation2]  }
  0x15   : > { %p454_p1 = pneg %p772_p12  ;;  %s682_s8 = smov [#allocation6]  }
  0x16   : > { %s33_s9 = sadd.s32 1, %s675_s16  ;;  %s169_s10 = sand.u32 1, %s667_s14  }
  0x17   : > { %s148_s28 = sshll.u32 %s882_s0, 4  ;;  %p455_p4 = pnand %p454_p1, %p745_p3  ;;  %s149_s28 = int_to_ptr.hbm [resolvable:$true] %s148_s28 }
  0x18   : > { %p35_p6 = scmp.ge.s32.totalorder %s33_s9, 2  ;;  %s438_s11 = smul.u32 6, %s169_s10 }
  0x19   : > { %457 = dma.hbm_to_smem (!%p455_p4), %s149_s28, 64, %s681_s7, [#allocation5]  }
  0x1a   : > { %460 = dma.hbm_to_smem (!%p455_p4), %s159_s5, 16, %s682_s8, [#allocation7]  }
  0x1b   : > { %s891_s9 = smov (%p35_p6, %s33_s9), 0  ;;  %s439_s18 = smul.u32 6, %s675_s16 }
  0x1c   : > { %s79_s19 = ssub.s32 %s675_s16, %s891_s9  ;;  %s173_s22 = scalar_lea.vmem [#allocation8], %s438_s11 }
  0x1d   : > { %s182_s26 = sshll.u32 %s173_s22, 4  ;;  %p82_p5 = scmp.eq.s32.totalorder %s79_s19, 0  ;;  %s183_s26 = int_to_ptr.vmem [resolvable:$true] %s182_s26 }
  0x1e   : > { %s179_s28 = scalar_lea.hbm %s874_s2, %s439_s18  ;;  %s170_s7 = scalar_lea.sflag [#allocation3], %s169_s10 }
  0x1f   : > { %s180_s4 = sshll.u32 %s179_s28, 4  ;;  %s683_s8 = smov 32   ;;  %s181_s4 = int_to_ptr.hbm [resolvable:$true] %s180_s4 }
  0x20   : > { %s804_s5 = scalar_select %p82_p5, %s667_s14, %s84_s20  }
  0x21   : > { %s684_s0 = smov 2   ;;  %194 = sbr.rel (%p772_p12) target bundleno = 76 (0x4c), region = 32 }
  0x22   : > { %464 = dma.hbm_to_vmem [thread:$0]  (!%p785_p2), %s181_s4, 96, %s183_s26, %s170_s7, %s683_s8, %s683_s8, %s684_s0  }
  0x26   : > { %642 = dma.done.wait (%p745_p3), [#allocation5], 64  }
  0x27   : > { %644 = vsyncadd (%p745_p3), [#allocation5], 4294967232 }
  0x28   : > { %646 = dma.done.wait (%p745_p3), [#allocation7], 16  }
  0x29   : > { %648 = vsyncadd (%p745_p3), [#allocation7], 4294967280  ;;  %s819_s20 = sand.u32 1, %s663_s13  }
  0x2a   : > { %s440_s0 = smul.u32 6, %s819_s20  ;;  %s207_s29 = scalar_lea.sflag [#allocation3], %s819_s20 }
  0x2c   : > { %s210_s6 = scalar_lea.vmem [#allocation8], %s440_s0 }
  0x2d   : > { %650 = dma.done.wait (%p755_p7), %s207_s29, 96  }
  0x2e   : > { %652 = vsyncadd (%p755_p7), %s207_s29, 4294967200 }
  0x2f   : > { %216 = sfence }
  0x30   : > { %s240_s10 = sld [smem:[#allocation2]]  ;;  %v235_v0 = vld [vmem:[%s210_s6] sm:$0x3]  ;;  %v421_v1 = vld [vmem:[%s210_s6 + $0x2] sm:$0x3]  ;;  %s441_s7 = smul.u32 6, %s671_s15 }
  0x31   : > { %s425_s21 = sld [smem:[#allocation2 + $0x80]]  ;;  %v422_v2 = vld [vmem:[%s210_s6 + $0x4] sm:$0x3]  ;;  %s234_s8 = scalar_lea.vmem [#allocation9], %s440_s0 }
  0x32   : > { %s428_s11 = sld [smem:[#allocation2 + $0x100]]  ;;  %s301_s15 = sshll.u32 %s234_s8, 4  ;;  %s302_s15 = int_to_ptr.vmem [resolvable:$true] %s301_s15 }
  0x33   : > { %s249_s18 = sld [smem:[#allocation6]]  ;;  %s288_s0 = scalar_lea.sflag [#allocation4], %s819_s20 }
  0x34   : > { %s423_s19 = sld [smem:[#allocation2 + $0x1]] }
  0x35   : > { %s426_s22 = sld [smem:[#allocation2 + $0x81]] }
  0x36   : > { %v252_v3 = vstv %s240_s10  ;;  %s429_s26 = sld [smem:[#allocation2 + $0x101]]  ;;  %s300_s10 = scalar_lea.hbm %s875_s3, %s441_s7 }
  0x37   : > { %v253_v4 = vmul.f32 %v252_v3, %v235_v0  ;;  %v254_v5 = vstv %s425_s21  ;;  %s829_s27 = sld [smem:[#allocation6 + $0x1]]  ;;  %s303_s21 = sshll.u32 %s300_s10, 4  ;;  %s304_s21 = int_to_ptr.hbm [resolvable:$true] %s303_s21 }
  0x38   : > { %v255_v6 = vmul.f32 %v421_v1, %v254_v5  ;;  %v257_v7 = vstv %s428_s11  ;;  %s424_s23 = sld [smem:[#allocation2 + $0x2]]  ;;  %s603_s11 = sshra.s32 %s304_s21, 4  ;;  %s604_s11 = int_to_ptr.hbm [resolvable:$true] %s603_s11 }
  0x39   : > { %v258_v8 = vmul.f32 %v422_v2, %v257_v7  ;;  %s427_s30 = sld [smem:[#allocation2 + $0x82]]  ;;  %v260_v11 = vstv %s249_s18  ;;  %s605_s18 = scalar_lea.hbm %s604_s11, 6 }
  0x3a   : > { %v256_v9 = vadd.f32 %v255_v6, %v253_v4  ;;  %v263_v10 = vstv %s423_s19  ;;  %s430_s28 = sld [smem:[#allocation2 + $0x102]]  ;;  %p606_p3 = scmp.ne.s32.totalorder %s604_s11, %s605_s18 }
  0x3b   : > { %v264_v12 = vmul.f32 %v263_v10, %v235_v0  ;;  %v265_v13 = vstv %s426_s22  ;;  %s432_s4 = sld [smem:[#allocation6 + $0x2]]  ;;  %p610_p11 = scmp.lt.s32.totalorder %s604_s11, %s875_s3 }
  0x3c   : > { %v259_v14 = vadd.f32 %v258_v8, %v256_v9  ;;  %v266_v15 = vmul.f32 %v421_v1, %v265_v13  ;;  %v268_v16 = vstv %s429_s26  ;;  %p607_p7 = pnand %p606_p3, %p759_p8  ;;  %s609_s26 = scalar_lea.hbm %s875_s3, 12 }
  0x3d   : > { %v269_v17 = vmul.f32 %v422_v2, %v268_v16  ;;  %v271_v21 = vstv %s829_s27  ;;  %p611_p12 = scmp.lt.s32.totalorder %s609_s26, %s605_s18 }
  0x3e   : > { %v261_v18 = vadd.f32 %v260_v11, %v259_v14  ;;  %v267_v19 = vadd.f32 %v266_v15, %v264_v12  ;;  %v275_v20 = vstv %s424_s23  ;;  %p608_p10 = pneg %p607_p7 }
  0x3f   : > { %v276_v22 = vmul.f32 %v275_v20, %v235_v0  ;;  %v277_v23 = vstv %s427_s30  ;;  %p612_p0 = por %p611_p12, %p610_p11 }
  0x40   : > { %262 = vst [vmem:[%s234_s8] sm:$0x3] %v261_v18  ;;  %v270_v24 = vadd.f32 %v269_v17, %v267_v19  ;;  %v278_v25 = vmul.f32 %v421_v1, %v277_v23  ;;  %v280_v26 = vstv %s430_s28 }
  0x41   : > { %v281_v27 = vmul.f32 %v422_v2, %v280_v26  ;;  %v283_v30 = vstv %s432_s4  ;;  %p613_p1 = pnand %p612_p0, %p608_p10 }
  0x42   : > { %v272_v28 = vadd.f32 %v271_v21, %v270_v24  ;;  %v279_v29 = vadd.f32 %v278_v25, %v276_v22 }
  0x44   : > { %433 = vst [vmem:[%s234_s8 + $0x2] sm:$0x3] %v272_v28  ;;  %v282_v31 = vadd.f32 %v281_v27, %v279_v29 }
  0x46   : > { %v284_v32 = vadd.f32 %v283_v30, %v282_v31 }
  0x48   : > { %434 = vst [vmem:[%s234_s8 + $0x4] sm:$0x3] %v284_v32 }
  0x49   : > { %616 = shalt.err (!%p613_p1)
}
  0x4a   : > { %s685_s20 = smov 32   ;;  %s686_s30 = smov 2  }
  0x4b   : > { %452 = dma.vmem_to_hbm [thread:$0]  (%p759_p8), %s302_s15, 96, %s304_s21, %s288_s0, %s685_s20, %s685_s20, %s686_s30  }
  0x4c PF: > { %s318_s28 = sand.u32 1, %s659_s12   ;;  %p466_p2 = pnand %p416_p13, %p763_p9 }
  0x4d   : > { %s319_s4 = scalar_lea.sflag [#allocation4], %s318_s28 }
  0x4e   : > { %p467_p4 = pneg %p466_p2 }
  0x50   : > { %654 = dma.done.wait (%p467_p4), %s319_s4, 96  }
  0x51   : > { %656 = vsyncadd (%p467_p4), %s319_s4, 4294967200  ;;  %s21_s17 = sadd.s32 1, %s679_s17   ;;  %s885_s12 = smov %s663_s13 }
  0x52   : > { %p18_p6 = scmp.ge.s32.totalorder %s21_s17, 4   ;;  %s886_s13 = smov %s667_s14 }
  0x53   : > { %s887_s14 = smov %s804_s5  ;;  %s888_s15 = smov %s675_s16 }
  0x54   : > { %s889_s16 = smov %s891_s9  ;;  %20 = sbr.rel (!%p18_p6) target bundleno = 10 (0xa), region = 90 }
  0x59   :  { %325 = vsyncpa [#allocation3], 1 }
  0x5a   :  { %327 = vsyncpa [#allocation3 + $0x1], 1 }
  0x5b   :  { %328 = vsyncpa [#allocation4], 1 }
  0x5c   :  { %330 = vsyncpa [#allocation4 + $0x1], 1 }
  0x5d   :  { %331 = vsyncpa [#allocation5], 1 }
  0x5e   :  { %333 = vsyncpa [#allocation5 + $0x1], 1 }
  0x5f   :  { %334 = vsyncpa [#allocation7], 1 }

</bundles_post_ra>
